<compile_context>
chip_gen: v5e
topology: v5e:2x2
jax: 0.10.0
libtpu: 0.0.40
codegen_flags: <defaults>
</compile_context>

<pallas_src>
import numpy as np
import jax
import jax.numpy as jnp
from jax.experimental import pallas as pl
from jax.experimental.pallas import tpu as pltpu


# ---------------------------------------------------------------------------
# Small helpers
# ---------------------------------------------------------------------------

def _round_up(x: int, m: int) -> int:
    return pl.cdiv(x, m) * m


def _sublane_multiple(dtype) -> int:
    # Minimum sublane tiling multiple for the second-to-last block dim.
    return {4: 8, 2: 16, 1: 32}[jnp.dtype(dtype).itemsize]


def _int_pow(x, n: int):
    """x**n for a static non-negative integer n via binary exponentiation."""
    if n == 0:
        return jnp.ones_like(x)
    result = None
    base = x
    while n:
        if n & 1:
            result = base if result is None else result * base
        n >>= 1
        if n:
            base = base * base
    return result


def _vmem_capacity_bytes() -> int:
    try:
        return int(pltpu.get_tpu_info().vmem_capacity_bytes)
    except Exception:
        return 64 << 20  # conservative default: assume the smallest (v7x-sized) VMEM


def _pick_block_rows(rows: int, sub: int, row_bytes: int, max_block_bytes: int) -> int:
    """Largest input block that fits the VMEM budget; best-effort even block count."""
    max_rows = max(sub, (max_block_bytes // max(row_bytes, 1)) // sub * sub)
    if rows <= max_rows:
        return rows                       # single block covering everything (full dim OK)
    n = pl.cdiv(rows, max_rows)
    if n % 2:
        n += 1                            # even #blocks -> balanced 2-TC split on v7x
    return min(max_rows, _round_up(pl.cdiv(rows, n), sub))


def _is_harmonic_ladder(freq) -> bool:
    """True iff freq is concrete and freq_j == (j+1) * freq_0 (the default init)."""
    try:
        f = np.asarray(freq, dtype=np.float64)
    except Exception:
        return False                      # traced (e.g. under jit) -> general sin path
    if f.ndim != 1 or f.shape[0] == 0 or f[0] == 0.0:
        return False
    return bool(np.allclose(f, f[0] * np.arange(1, f.shape[0] + 1), rtol=1e-6, atol=0.0))


# ---------------------------------------------------------------------------
# Fused BesselBasisLayer kernel
# ---------------------------------------------------------------------------

def _make_bessel_kernel(num_radial: int, p: int, a: float, b: float, c: float,
                        inv_cutoff: float, harmonic: bool):
    def kernel(freq_ref, d_ref, o_ref):
        # f32 compute regardless of storage dtype; fold the 1/cutoff scale in-kernel.
        x = d_ref[...].astype(jnp.float32) * inv_cutoff

        # Envelope: 1/x + x^(p-1) * (a + x*(b + c*x)), zeroed where x >= 1.
        inv_x = pl.reciprocal(x, approx=False)          # EUP slot; exact for tolerance
        env = inv_x + _int_pow(x, p - 1) * (a + x * (b + c * x))
        env = jnp.where(x < 1.0, env, 0.0)

        if harmonic:
            # freq_j = (j+1)*freq_0: Chebyshev recurrence -> one sin + one cos total.
            t = freq_ref[0] * x
            s_prev = jnp.zeros_like(x)                  # sin(0*t)
            s_cur = jnp.sin(t)                          # sin(1*t)
            two_cos = 2.0 * jnp.cos(t)
            for j in range(num_radial):
                o_ref[j] = (env * s_cur).astype(o_ref.dtype)
                s_prev, s_cur = s_cur, two_cos * s_cur - s_prev
        else:
            # General (trained) frequencies: exact module semantics.
            for j in range(num_radial):
                o_ref[j] = (env * jnp.sin(freq_ref[j] * x)).astype(o_ref.dtype)

    return kernel


def bessel_basis_forward(dist: jax.Array, freq: jax.Array, *, cutoff: float = 5.0,
                         envelope_exponent: int = 5, lane_width: int | None = None,
                         target_block_bytes: int | None = None) -> jax.Array:
    """BesselBasisLayer.forward: dist (E,), freq (R,) -> (E, R)."""
    assert dist.ndim == 1 and freq.ndim == 1
    E = dist.shape[0]
    R = freq.shape[0]
    dtype = dist.dtype
    assert jnp.issubdtype(dtype, jnp.floating)
    sub = _sublane_multiple(dtype)
    itemsize = jnp.dtype(dtype).itemsize

    # --- lane-dense slab geometry (small-problem path shrinks lane_width) -----------
    if lane_width is None:
        lane_width = 1024 if E >= 8 * 1024 else max(128, _round_up(pl.cdiv(E, sub), 128))
    assert lane_width % 128 == 0
    e_pad = _round_up(E, lane_width)
    rows = e_pad // lane_width

    # Pad only up to a lane_width multiple (pure reshape when E already divides).
    d = dist if e_pad == E else jnp.pad(dist, (0, e_pad - E), constant_values=1.5)
    d_slab = d.reshape(rows, lane_width)

    # --- generation-aware tiling / VMEM budget ---------------------------------------
    vmem_cap = _vmem_capacity_bytes()
    vmem_budget = min(64 << 20, vmem_cap // 2)       # ~64 MiB on v5e/v6e, ~32 MiB on v7x
    if target_block_bytes is None:
        # Live VMEM ~ 2 * (1 + R) * input_block_bytes (in + Rx-larger out, double-buffered).
        target_block_bytes = max(sub * lane_width * itemsize,
                                 (3 * vmem_budget // 4) // (2 * (1 + R)))
    block_rows = _pick_block_rows(rows, sub, lane_width * itemsize, target_block_bytes)
    grid = (pl.cdiv(rows, block_rows),)

    # --- envelope constants (static) --------------------------------------------------
    p = envelope_exponent + 1
    a = float(-(p + 1) * (p + 2) / 2)
    b = float(p * (p + 2))
    c = float(-p * (p + 1) / 2)

    harmonic = _is_harmonic_ladder(freq)
    kernel = _make_bessel_kernel(R, p, a, b, c, float(1.0 / cutoff), harmonic)

    cost = pl.CostEstimate(
        flops=(12 + 4 * R) * e_pad,
        transcendentals=(3 if harmonic else R + 1) * e_pad,   # recip + sin/cos
        bytes_accessed=(1 + R) * e_pad * itemsize,
    )

    out = pl.pallas_call(
        kernel,
        out_shape=jax.ShapeDtypeStruct((R, rows, lane_width), dtype),
        grid_spec=pltpu.PrefetchScalarGridSpec(
            num_scalar_prefetch=1,                              # freq -> SMEM scalars
            grid=grid,
            in_specs=[pl.BlockSpec((block_rows, lane_width),
                                   lambda i, freq_ref: (i, 0))],
            out_specs=pl.BlockSpec((R, block_rows, lane_width),
                                   lambda i, freq_ref: (0, i, 0)),
        ),
        compiler_params=pltpu.CompilerParams(
            dimension_semantics=("parallel",),
            vmem_limit_bytes=int(vmem_budget),
        ),
        cost_estimate=cost,
    )(freq.astype(jnp.float32), d_slab)

    # TODO(synk): the final lane-dense (R, E) -> (E, R) transpose stays in XLA; it is far
    # cheaper than emitting an 8-lane-wide (E, R) output from the kernel via masked stores.
    return out.reshape(R, e_pad)[:, :E].T


# ---------------------------------------------------------------------------
# Pure-JAX references (match the PyTorch module exactly)
# ---------------------------------------------------------------------------

def envelope_ref(x: jax.Array, exponent: int) -> jax.Array:
    p = exponent + 1
    a = -(p + 1) * (p + 2) / 2
    b = p * (p + 2)
    c = -p * (p + 1) / 2
    x_pow_p0 = x ** (p - 1)
    x_pow_p1 = x_pow_p0 * x
    x_pow_p2 = x_pow_p1 * x
    return (1.0 / x + a * x_pow_p0 + b * x_pow_p1 + c * x_pow_p2) * (x < 1.0).astype(x.dtype)


def bessel_basis_ref(dist: jax.Array, freq: jax.Array, *, cutoff: float = 5.0,
                     envelope_exponent: int = 5) -> jax.Array:
    d = (dist / cutoff)[:, None]
    return envelope_ref(d, envelope_exponent) * jnp.sin(freq[None, :] * d)


# ---------------------------------------------------------------------------
# Demo / self-test
# ---------------------------------------------------------------------------

if __name__ == "__main__":
    key = jax.random.PRNGKey(0)
    k1, k2 = jax.random.split(key)

    cutoff, exponent = 5.0, 5

    # 1) Small default-parameter problem (harmonic freq ladder -> recurrence path).
    E, R = 200, 8
    dist = jax.random.uniform(k1, (E,), jnp.float32, minval=0.05, maxval=1.5 * cutoff)
    freq = jnp.arange(1, R + 1, dtype=jnp.float32) * jnp.float32(np.pi)   # reset_parameters()

    out = jax.block_until_ready(
        bessel_basis_forward(dist, freq, cutoff=cutoff, envelope_exponent=exponent))
    ref = bessel_basis_ref(dist, freq, cutoff=cutoff, envelope_exponent=exponent)
    assert out.shape == (E, R) and out.dtype == ref.dtype
    # atol loosened: catastrophic cancellation of the envelope near d=1 plus the f32
    # Chebyshev recurrence vs. per-radial sin ordering.
    assert jnp.allclose(out, ref, rtol=1e-5, atol=1e-4), "harmonic-freq path mismatch"

    # 2) Larger, ragged-E, multi-block, non-harmonic ("trained") frequencies ->
    #    general per-radial sin path; small target block forces grid > 1 + ragged tail.
    E2 = 12_345
    dist2 = jax.random.uniform(k2, (E2,), jnp.float32, minval=0.05, maxval=1.5 * cutoff)
    freq2 = freq + 0.173 * jnp.arange(R, dtype=jnp.float32) ** 2           # not a ladder
    out2 = jax.block_until_ready(
        bessel_basis_forward(dist2, freq2, cutoff=cutoff, envelope_exponent=exponent,
                             target_block_bytes=32 * 1024))
    ref2 = bessel_basis_ref(dist2, freq2, cutoff=cutoff, envelope_exponent=exponent)
    assert out2.shape == (E2, R)
    assert jnp.allclose(out2, ref2, rtol=1e-5, atol=1e-4), "general-freq path mismatch"

    print("KERNEL_OK")
</pallas_src>

<mosaic_0001>
module attributes {stable_mosaic.version = 11 : i64} {
  func.func @kernel(%arg0: i32, %arg1: memref<8xf32, #tpu.memory_space<smem>>, %arg2: memref<2x128xf32, #tpu.memory_space<vmem>>, %arg3: memref<8x2x128xf32, #tpu.memory_space<vmem>>) attributes {dimension_semantics = [#tpu.dimension_semantics<parallel>], iteration_bounds = array<i64: 1>, scalar_prefetch = 1 : i64, scratch_operands = 0 : i64, tpu.core_type = #tpu.core_type<tc>, window_params = [{transform_indices = @transform_0, window_bounds = array<i64: 2, 128>}, {transform_indices = @transform_1, window_bounds = array<i64: 8, 2, 128>}]} {
    %c0 = arith.constant 0 : index
    %c0_0 = arith.constant 0 : index
    %0 = vector.load %arg2[%c0, %c0_0] : memref<2x128xf32, #tpu.memory_space<vmem>>, vector<2x128xf32>
    %cst = arith.constant 2.000000e-01 : f32
    %1 = vector.broadcast %cst : f32 to vector<2x128xf32>
    %2 = arith.mulf %0, %1 : vector<2x128xf32>
    %3 = tpu.reciprocal %2 : vector<2x128xf32> -> vector<2x128xf32>
    %4 = arith.mulf %2, %2 : vector<2x128xf32>
    %5 = arith.mulf %4, %4 : vector<2x128xf32>
    %6 = arith.mulf %2, %5 : vector<2x128xf32>
    %cst_1 = arith.constant -2.100000e+01 : f32
    %7 = vector.broadcast %cst_1 : f32 to vector<2x128xf32>
    %8 = arith.mulf %7, %2 : vector<2x128xf32>
    %cst_2 = arith.constant 4.800000e+01 : f32
    %9 = vector.broadcast %cst_2 : f32 to vector<2x128xf32>
    %10 = arith.addf %9, %8 : vector<2x128xf32>
    %11 = arith.mulf %2, %10 : vector<2x128xf32>
    %cst_3 = arith.constant -2.800000e+01 : f32
    %12 = vector.broadcast %cst_3 : f32 to vector<2x128xf32>
    %13 = arith.addf %12, %11 : vector<2x128xf32>
    %14 = arith.mulf %6, %13 : vector<2x128xf32>
    %15 = arith.addf %3, %14 : vector<2x128xf32>
    %cst_4 = arith.constant 1.000000e+00 : f32
    %16 = vector.broadcast %cst_4 : f32 to vector<2x128xf32>
    %17 = arith.cmpf olt, %2, %16 : vector<2x128xf32>
    %cst_5 = arith.constant 0.000000e+00 : f32
    %18 = vector.broadcast %cst_5 : f32 to vector<2x128xf32>
    %19 = arith.select %17, %15, %18 : vector<2x128xi1>, vector<2x128xf32>
    %c0_6 = arith.constant 0 : index
    %20 = memref.load %arg1[%c0_6] : memref<8xf32, #tpu.memory_space<smem>>
    %21 = vector.broadcast %20 : f32 to vector<2x128xf32>
    %22 = arith.mulf %21, %2 : vector<2x128xf32>
    %cst_7 = arith.constant 0.000000e+00 : f32
    %23 = vector.broadcast %cst_7 : f32 to vector<2x128xf32>
    %24 = math.sin %22 : vector<2x128xf32>
    %25 = math.cos %22 : vector<2x128xf32>
    %cst_8 = arith.constant 2.000000e+00 : f32
    %26 = vector.broadcast %cst_8 : f32 to vector<2x128xf32>
    %27 = arith.mulf %26, %25 : vector<2x128xf32>
    %28 = arith.mulf %19, %24 : vector<2x128xf32>
    %c0_9 = arith.constant 0 : index
    %c0_10 = arith.constant 0 : index
    %c0_11 = arith.constant 0 : index
    %29 = vector.load %arg3[%c0_9, %c0_10, %c0_11] : memref<8x2x128xf32, #tpu.memory_space<vmem>>, vector<1x2x128xf32>
    %30 = vector.shape_cast %29 : vector<1x2x128xf32> to vector<2x128xf32>
    %31 = vector.shape_cast %28 : vector<2x128xf32> to vector<1x2x128xf32>
    tpu.vector_store %arg3[%c0_9, %c0_10, %c0_11], %31 {strides = array<i32>} : memref<8x2x128xf32, #tpu.memory_space<vmem>>, vector<1x2x128xf32>,
    %32 = arith.mulf %27, %24 : vector<2x128xf32>
    %33 = arith.subf %32, %23 : vector<2x128xf32>
    %34 = arith.mulf %19, %33 : vector<2x128xf32>
    %c1 = arith.constant 1 : index
    %c0_12 = arith.constant 0 : index
    %c0_13 = arith.constant 0 : index
    %35 = vector.load %arg3[%c1, %c0_12, %c0_13] : memref<8x2x128xf32, #tpu.memory_space<vmem>>, vector<1x2x128xf32>
    %36 = vector.shape_cast %35 : vector<1x2x128xf32> to vector<2x128xf32>
    %37 = vector.shape_cast %34 : vector<2x128xf32> to vector<1x2x128xf32>
    tpu.vector_store %arg3[%c1, %c0_12, %c0_13], %37 {strides = array<i32>} : memref<8x2x128xf32, #tpu.memory_space<vmem>>, vector<1x2x128xf32>,
    %38 = arith.mulf %27, %33 : vector<2x128xf32>
    %39 = arith.subf %38, %24 : vector<2x128xf32>
    %40 = arith.mulf %19, %39 : vector<2x128xf32>
    %c2 = arith.constant 2 : index
    %c0_14 = arith.constant 0 : index
    %c0_15 = arith.constant 0 : index
    %41 = vector.load %arg3[%c2, %c0_14, %c0_15] : memref<8x2x128xf32, #tpu.memory_space<vmem>>, vector<1x2x128xf32>
    %42 = vector.shape_cast %41 : vector<1x2x128xf32> to vector<2x128xf32>
    %43 = vector.shape_cast %40 : vector<2x128xf32> to vector<1x2x128xf32>
    tpu.vector_store %arg3[%c2, %c0_14, %c0_15], %43 {strides = array<i32>} : memref<8x2x128xf32, #tpu.memory_space<vmem>>, vector<1x2x128xf32>,
    %44 = arith.mulf %27, %39 : vector<2x128xf32>
    %45 = arith.subf %44, %33 : vector<2x128xf32>
    %46 = arith.mulf %19, %45 : vector<2x128xf32>
    %c3 = arith.constant 3 : index
    %c0_16 = arith.constant 0 : index
    %c0_17 = arith.constant 0 : index
    %47 = vector.load %arg3[%c3, %c0_16, %c0_17] : memref<8x2x128xf32, #tpu.memory_space<vmem>>, vector<1x2x128xf32>
    %48 = vector.shape_cast %47 : vector<1x2x128xf32> to vector<2x128xf32>
    %49 = vector.shape_cast %46 : vector<2x128xf32> to vector<1x2x128xf32>
    tpu.vector_store %arg3[%c3, %c0_16, %c0_17], %49 {strides = array<i32>} : memref<8x2x128xf32, #tpu.memory_space<vmem>>, vector<1x2x128xf32>,
    %50 = arith.mulf %27, %45 : vector<2x128xf32>
    %51 = arith.subf %50, %39 : vector<2x128xf32>
    %52 = arith.mulf %19, %51 : vector<2x128xf32>
    %c4 = arith.constant 4 : index
    %c0_18 = arith.constant 0 : index
    %c0_19 = arith.constant 0 : index
    %53 = vector.load %arg3[%c4, %c0_18, %c0_19] : memref<8x2x128xf32, #tpu.memory_space<vmem>>, vector<1x2x128xf32>
    %54 = vector.shape_cast %53 : vector<1x2x128xf32> to vector<2x128xf32>
    %55 = vector.shape_cast %52 : vector<2x128xf32> to vector<1x2x128xf32>
    tpu.vector_store %arg3[%c4, %c0_18, %c0_19], %55 {strides = array<i32>} : memref<8x2x128xf32, #tpu.memory_space<vmem>>, vector<1x2x128xf32>,
    %56 = arith.mulf %27, %51 : vector<2x128xf32>
    %57 = arith.subf %56, %45 : vector<2x128xf32>
    %58 = arith.mulf %19, %57 : vector<2x128xf32>
    %c5 = arith.constant 5 : index
    %c0_20 = arith.constant 0 : index
    %c0_21 = arith.constant 0 : index
    %59 = vector.load %arg3[%c5, %c0_20, %c0_21] : memref<8x2x128xf32, #tpu.memory_space<vmem>>, vector<1x2x128xf32>
    %60 = vector.shape_cast %59 : vector<1x2x128xf32> to vector<2x128xf32>
    %61 = vector.shape_cast %58 : vector<2x128xf32> to vector<1x2x128xf32>
    tpu.vector_store %arg3[%c5, %c0_20, %c0_21], %61 {strides = array<i32>} : memref<8x2x128xf32, #tpu.memory_space<vmem>>, vector<1x2x128xf32>,
    %62 = arith.mulf %27, %57 : vector<2x128xf32>
    %63 = arith.subf %62, %51 : vector<2x128xf32>
    %64 = arith.mulf %19, %63 : vector<2x128xf32>
    %c6 = arith.constant 6 : index
    %c0_22 = arith.constant 0 : index
    %c0_23 = arith.constant 0 : index
    %65 = vector.load %arg3[%c6, %c0_22, %c0_23] : memref<8x2x128xf32, #tpu.memory_space<vmem>>, vector<1x2x128xf32>
    %66 = vector.shape_cast %65 : vector<1x2x128xf32> to vector<2x128xf32>
    %67 = vector.shape_cast %64 : vector<2x128xf32> to vector<1x2x128xf32>
    tpu.vector_store %arg3[%c6, %c0_22, %c0_23], %67 {strides = array<i32>} : memref<8x2x128xf32, #tpu.memory_space<vmem>>, vector<1x2x128xf32>,
    %68 = arith.mulf %27, %63 : vector<2x128xf32>
    %69 = arith.subf %68, %57 : vector<2x128xf32>
    %70 = arith.mulf %19, %69 : vector<2x128xf32>
    %c7 = arith.constant 7 : index
    %c0_24 = arith.constant 0 : index
    %c0_25 = arith.constant 0 : index
    %71 = vector.load %arg3[%c7, %c0_24, %c0_25] : memref<8x2x128xf32, #tpu.memory_space<vmem>>, vector<1x2x128xf32>
    %72 = vector.shape_cast %71 : vector<1x2x128xf32> to vector<2x128xf32>
    %73 = vector.shape_cast %70 : vector<2x128xf32> to vector<1x2x128xf32>
    tpu.vector_store %arg3[%c7, %c0_24, %c0_25], %73 {strides = array<i32>} : memref<8x2x128xf32, #tpu.memory_space<vmem>>, vector<1x2x128xf32>,
    return
  }
  func.func @transform_0(%arg0: i32, %arg1: memref<8xf32, #tpu.memory_space<smem>>) -> (i32, i32) {
    %c0_i32 = arith.constant 0 : i32
    %c0_i32_0 = arith.constant 0 : i32
    return %arg0, %c0_i32 : i32, i32
  }
  func.func @transform_1(%arg0: i32, %arg1: memref<8xf32, #tpu.memory_space<smem>>) -> (i32, i32, i32) {
    %c0_i32 = arith.constant 0 : i32
    %c0_i32_0 = arith.constant 0 : i32
    %c0_i32_1 = arith.constant 0 : i32
    return %c0_i32, %arg0, %c0_i32_0 : i32, i32, i32
  }
}

</mosaic_0001>

<bundles_post_ra>
// kernel: tpu_custom_call.1
= control target key start
LH: loop header
LB: loop body
LE: loop exit
PB: predicated region body
PF: predicated region fallthrough
CT: control target
= control target key end

     0   :  { %s513_s12 = smov [#allocation3]   ;;  %s615_s0 = inlined_call_operand.hbm [shape: f32[8], index: 0, kind: input, shape index: {}]   ;;  %s616_s1 = inlined_call_operand.hbm [shape: f32[2,128], index: 1, kind: input, shape index: {}]   ;;  %s617_s2 = inlined_call_operand.hbm [shape: f32[8,2,128], index: 2, kind: output, shape index: {}]  }
   0x1   :  { %s8_s11 = sshll.u32 %s615_s0, 4  ;;  %s9_s11 = int_to_ptr.hbm [resolvable:$true] %s8_s11 }
   0x2   :  { %11 = dma.hbm_to_smem %s9_s11, 16, %s513_s12, [#allocation2] }
   0x3   :  { %507 = dma.done.wait [#allocation2], 16 }
   0x4   :  { %508 = vsyncadd [#allocation2], 4294967280 }
   0x5   :  { %14 = sfence }
   0x6   :  { %15 = vsyncpa [#allocation5], 0 }
   0x7   :  { %16 = vsyncpa [#allocation6], 0  ;;  %s22_s15 = sshll.u32 %s616_s1, 4  ;;  %s514_s16 = smov [#allocation4]   ;;  %s23_s15 = int_to_ptr.hbm [resolvable:$true] %s22_s15 }
   0x8   :  { %s24_s17 = sshll.u32 %s514_s16, 4  ;;  %s25_s17 = int_to_ptr.vmem [resolvable:$true] %s24_s17 }
   0x9   :  { %27 = dma.hbm_to_vmem [thread:$0]  %s23_s15, 32, %s25_s17, [#allocation5]  }
   0xa   :  { %509 = dma.done.wait [#allocation5], 32  }
   0xb   :  { %510 = vsyncadd [#allocation5], 4294967264  ;;  %s59_s0 = sld [smem:[#allocation3]]  ;;  %v32_v0 = vld [vmem:[#allocation4] sm:$0x3]  ;;  %s522_s1 = smov [#allocation7]  }
   0xc   :  { %v546_v1 = vmul.f32 0.2, %v32_v0  ;;  %v515_v15 = vmov 683565275   ;;  %v516_v17 = vmov 2475754826  }
   0xd   :  { %v517_v19 = vmov 2131351028   ;;  %v518_v21 = vmov 2102212464   ;;  %v519_v23 = vmov 920167782  }
   0xe   :  { %v520_v29 = vmov 1326507024   ;;  %445 = vrcp.f32 %v546_v1  ;;  %vm39_vm14 = vweird.f32 %v546_v1  ;;  %s412_s18 = sshll.u32 %s522_s1, 4  ;;  %s414_s21 = sshll.u32 %s617_s2, 4  ;;  %s413_s18 = int_to_ptr.vmem [resolvable:$true] %s412_s18  ;;  %s415_s21 = int_to_ptr.hbm [resolvable:$true] %s414_s21 }
   0xf   :  { %s523_s22 = smov 32   ;;  %s524_s23 = smov 2  }
  0x11   :  { %v60_v2 = vstv %s59_s0 }
  0x12   :  { %v549_v3 = vmul.f32 %v60_v2, %v546_v1 }
  0x14   :  { %v65_v4 = vand.u32 2139095040, %v549_v3  ;;  %v62_v6 = vand.u32 2147483647, %v549_v3  ;;  %vm64_vm12 = vcmp.lt.s32.totalorder %v549_v3, 0 }
  0x16   :  { %v66_v5 = vshrl.u32 %v65_v4, 23  ;;  %v69_v9 = vand.u32 8388607, %v62_v6  ;;  %vm63_vm13 = vcmp.le.f32.partialorder %v62_v6, 0.7853982 }
  0x18   :  { %v427_v7 = vadd.s32 4294967169, %v66_v5  ;;  %v70_v13 = vor.u32 8388608, %v69_v9  ;;  %v521_v5 = vmov 0  }
  0x1a   :  { %v72_v8 = vadd.s32 1, %v427_v7  ;;  %v558_v34 = vshll.u32 %v70_v13, 8 }
  0x1c   :  { %vm73_vm0 = vcmp.gt.s32.totalorder %v72_v8, 0  ;;  %v111_v43 = vand.u32 65535, %v558_v34  ;;  %v112_v44 = vshrl.u32 %v558_v34, 16 }
  0x1d   :  { %v74_v10 = vsel %vm73_vm0, %v72_v8, 0 }
  0x1e   :  { %v76_v11 = vand.u32 31, %v74_v10  ;;  %v555_v12 = vshrl.u32 %v74_v10, 5 }
  0x20   :  { %v77_v14 = vsub.s32 32, %v76_v11  ;;  %v79_v16 = vshll.u32 %v515_v15, %v76_v11  ;;  %v82_v18 = vshll.u32 %v516_v17, %v76_v11  ;;  %v85_v20 = vshll.u32 %v517_v19, %v76_v11 }
  0x21   :  { %v88_v22 = vshll.u32 %v518_v21, %v76_v11  ;;  %v91_v24 = vshll.u32 %v519_v23, %v76_v11  ;;  %vm94_vm1 = vcmp.lt.s32.totalorder %v555_v12, 1  ;;  %vm96_vm2 = vcmp.lt.s32.totalorder %v555_v12, 3 }
  0x22   :  { %v80_v25 = vshrl.u32 %v516_v17, %v77_v14  ;;  %v83_v26 = vshrl.u32 %v517_v19, %v77_v14  ;;  %v86_v27 = vshrl.u32 %v518_v21, %v77_v14  ;;  %v89_v28 = vshrl.u32 %v519_v23, %v77_v14 }
  0x23   :  { %v92_v30 = vshrl.u32 %v520_v29, %v77_v14  ;;  %vm97_vm3 = vcmp.lt.s32.totalorder %v555_v12, 4  ;;  %vm95_vm4 = vcmp.lt.s32.totalorder %v555_v12, 2  ;;  %v78_v51 = vshrl.u32 %v515_v15, %v77_v14 }
  0x24   :  { %v81_v31 = vor.u32 %v80_v25, %v79_v16  ;;  %v84_v32 = vor.u32 %v83_v26, %v82_v18  ;;  %v87_v33 = vor.u32 %v86_v27, %v85_v20  ;;  %v90_v35 = vor.u32 %v89_v28, %v88_v22 }
  0x25   :  { %v93_v36 = vor.u32 %v92_v30, %v91_v24 }
  0x26   :  { %v102_v37 = vsel %vm94_vm1, %v81_v31, %v84_v32  ;;  %v106_v38 = vsel %vm94_vm1, %v84_v32, %v87_v33  ;;  %v103_v39 = vsel %vm97_vm3, %v90_v35, 920167782  ;;  %v98_v0 = vsel %vm94_vm1, %v78_v51, %v81_v31 }
  0x27   :  { %v107_v40 = vsel %vm97_vm3, %v93_v36, 1326507024  ;;  %v104_v41 = vsel %vm96_vm2, %v87_v33, %v103_v39  ;;  %v99_v4 = vsel %vm97_vm3, %v87_v33, 2102212464 }
  0x28   :  { %v108_v42 = vsel %vm96_vm2, %v90_v35, %v107_v40  ;;  %v105_v45 = vsel %vm95_vm4, %v102_v37, %v104_v41  ;;  %v100_v16 = vsel %vm96_vm2, %v84_v32, %v99_v4 }
  0x29   :  { %v109_v46 = vsel %vm95_vm4, %v106_v38, %v108_v42  ;;  %v135_v49 = vand.u32 65535, %v105_v45  ;;  %v136_v50 = vshrl.u32 %v105_v45, 16  ;;  %v101_v24 = vsel %vm95_vm4, %v98_v0, %v100_v16 }
  0x2a   :  { %v113_v47 = vand.u32 65535, %v109_v46  ;;  %v114_v48 = vshrl.u32 %v109_v46, 16  ;;  %v155_v28 = vmul.u32 %v558_v34, %v101_v24  ;;  %vm57_vm4 = vcmp.lt.f32.partialorder %v546_v1, 1.0 }
  0x2b   :  { %v137_v55 = vmul.u32 %v135_v49, %v111_v43  ;;  %v138_v56 = vmul.u32 %v136_v50, %v111_v43  ;;  %v139_v57 = vmul.u32 %v135_v49, %v112_v44  ;;  %v140_v61 = vmul.u32 %v136_v50, %v112_v44 }
  0x2c   :  { %v115_v52 = vmul.u32 %v113_v47, %v111_v43  ;;  %v116_v53 = vmul.u32 %v114_v48, %v111_v43  ;;  %v117_v54 = vmul.u32 %v113_v47, %v112_v44  ;;  %v118_v58 = vmul.u32 %v114_v48, %v112_v44  ;;  %v446_v48 = vpop.eup %445 }
  0x2d   :  { %v141_v62 = vshll.u32 %v138_v56, 16  ;;  %v143_v63 = vshll.u32 %v139_v57, 16  ;;  %v142_v14 = vshrl.u32 %v138_v56, 16  ;;  %v144_v20 = vshrl.u32 %v139_v57, 16 }
  0x2e   :  { %v119_v59 = vshll.u32 %v116_v53, 16  ;;  %v121_v60 = vshll.u32 %v117_v54, 16  ;;  %v120_v9 = vshrl.u32 %v116_v53, 16  ;;  %v122_v17 = vshrl.u32 %v117_v54, 16 }
  0x2f   :  { %vm145_vm6 = vc.u32 %v137_v55, %v141_v62  ;;  %v147_v8 = vadd.s32 %v141_v62, %v137_v55  ;;  %v35_v51 = vmul.f32 %v446_v48, %v546_v1  ;;  %v51_v53 = vmul.f32 -21.0, %v546_v1 }
  0x30   :  { %vm123_vm5 = vc.u32 %v115_v52, %v119_v59  ;;  %v125_v2 = vadd.s32 %v119_v59, %v115_v52  ;;  %v146_v11 = vsel %vm145_vm6, 1, %v521_v5  ;;  %vm40_vm15 = vweird.f32 %v446_v48 }
  0x31   :  { %v124_v7 = vsel %vm123_vm5, 1, %v521_v5  ;;  %v148_v15 = vadd.s32 %v146_v11, %v140_v61  ;;  %vm149_vm8 = vc.u32 %v147_v8, %v143_v63  ;;  %v151_v23 = vadd.s32 %v147_v8, %v143_v63  ;;  %vm603_vm0 = vmor %vm39_vm14, %vm40_vm15 }
  0x32   :  { %v126_v10 = vadd.s32 %v124_v7, %v118_v58  ;;  %vm127_vm7 = vc.u32 %v125_v2, %v121_v60  ;;  %v150_v19 = vsel %vm149_vm8, 1, %v521_v5  ;;  %v36_v56 = vsub.f32 1.0, %v35_v51 }
  0x33   :  { %v128_v13 = vsel %vm127_vm7, 1, %v521_v5  ;;  %v152_v21 = vadd.s32 %v150_v19, %v148_v15  ;;  %v48_v58 = vmul.f32 %v546_v1, %v546_v1  ;;  %v52_v59 = vadd.f32 48.0, %v51_v53 }
  0x34   :  { %v130_v18 = vadd.s32 %v128_v13, %v126_v10  ;;  %v37_v63 = vmul.f32 %v446_v48, %v36_v56  ;;  %v45_v8 = vand.u32 2147483648, %v546_v1  ;;  %v43_v10 = vand.u32 2147483647, %v546_v1 }
  0x35   :  { %v153_v25 = vadd.s32 %v152_v21, %v142_v14  ;;  %v49_v2 = vmul.f32 %v48_v58, %v48_v58  ;;  %v53_v4 = vmul.f32 %v52_v59, %v546_v1 }
  0x36   :  { %v131_v22 = vadd.s32 %v130_v18, %v120_v9  ;;  %v38_v9 = vadd.f32 %v446_v48, %v37_v63  ;;  %vm44_vm1 = vcmp.eq.f32.partialorder %v43_v10, 8.507059e+37 }
  0x37   :  { %v154_v27 = vadd.s32 %v153_v25, %v144_v20  ;;  %v50_v16 = vmul.f32 %v49_v2, %v546_v1  ;;  %v46_v20 = vor.u32 1.1754944e-38, %v45_v8 }
  0x38   :  { %v132_v26 = vadd.s32 %v131_v22, %v122_v17  ;;  %v54_v17 = vadd.f32 -28.0, %v53_v4  ;;  %v42_v21 = vsel %vm603_vm0, %v446_v48, %v38_v9 }
  0x39   :  { %v158_v29 = vadd.s32 1, %v154_v27 }
  0x3a   :  { %vm157_vm9 = vc.u32 %v132_v26, %v151_v23  ;;  %v156_v12 = vadd.s32 %v151_v23, %v132_v26  ;;  %v55_v26 = vmul.f32 %v54_v17, %v50_v16 }
  0x3b   :  { %v159_v30 = vsel %vm157_vm9, %v158_v29, %v154_v27  ;;  %v47_v29 = vsel %vm44_vm1, %v46_v20, %v42_v21  ;;  %vm205_vm9 = vweird.f32 %v549_v3 }
  0x3c   :  { %v160_v31 = vadd.s32 %v159_v30, %v155_v28 }
  0x3e   :  { %v161_v32 = vadd.s32 536870912, %v160_v31 }
  0x40   :  { %v162_v33 = vshrl.u32 %v161_v32, 30  ;;  %v56_v32 = vadd.f32 %v55_v26, %v47_v29 }
  0x42   :  { %v163_v35 = vshll.u32 %v162_v33, 30  ;;  %v186_v55 = vsub.s32 4, %v162_v33 }
  0x44   :  { %v164_v36 = vsub.s32 %v160_v31, %v163_v35  ;;  %v187_v61 = vsel %vm64_vm12, %v186_v55, %v162_v33 }
  0x45   :  { %v189_v5 = vsel %vm63_vm13, 0, %v187_v61 }
  0x46   :  { %vm165_vm10 = vcmp.lt.s32.totalorder %v164_v36, 0  ;;  %v166_v37 = vsub.s32 0, %v164_v36  ;;  %v206_v15 = vadd.s32 3, %v189_v5  ;;  %v361_v25 = vand.u32 3, %v189_v5 }
  0x48   :  { %v167_v38 = vsel %vm165_vm10, %v166_v37, %v164_v36  ;;  %v207_v24 = vand.u32 3, %v206_v15  ;;  %vm366_vm3 = vcmp.eq.s32.totalorder %v361_v25, 2  ;;  %vm363_vm7 = vcmp.eq.s32.totalorder %v361_v25, 0 }
  0x49   :  { %v168_v39 = vclz %v167_v38  ;;  %vm362_vm8 = vcmp.lt.s32.totalorder %v361_v25, 2 }
  0x4a   :  { %vm212_vm2 = vcmp.eq.s32.totalorder %v207_v24, 2  ;;  %vm208_vm5 = vcmp.lt.s32.totalorder %v207_v24, 2  ;;  %vm209_vm6 = vcmp.eq.s32.totalorder %v207_v24, 0 }
  0x4b   :  { %v428_v40 = vadd.s32 4294967294, %v168_v39  ;;  %v58_v39 = vsel %vm57_vm4, %v56_v32, 0.0 }
  0x4d   :  { %vm429_vm11 = vcmp.lt.s32.totalorder %v428_v40, 0 }
  0x4e   :  { %v171_v41 = vsel %vm429_vm11, 0, %v428_v40 }
  0x4f   :  { %v172_v42 = vsub.s32 32, %v171_v41  ;;  %v173_v34 = vshll.u32 %v164_v36, %v171_v41  ;;  %v176_v43 = vsub.s32 4294967266, %v171_v41 }
  0x51   :  { %v174_v44 = vshrl.u32 %v156_v12, %v172_v42  ;;  %v177_v45 = vadd.s32 127, %v176_v43 }
  0x53   :  { %v175_v46 = vor.u32 %v174_v44, %v173_v34  ;;  %v178_v47 = vshll.u32 %v177_v45, 23 }
  0x55   :  { %v179_v49 = vor.u32 4788187, %v178_v47  ;;  %v182_v50 = vcvt.s32.f32 %v175_v46 }
  0x57   :  { %v180_v52 = vand.u32 2147483647, %v179_v49 }
  0x59   :  { %v183_v54 = vmul.f32 %v182_v50, %v180_v52 }
  0x5b   :  { %v184_v57 = vxor.u32 2147483648, %v183_v54 }
  0x5d   :  { %v185_v60 = vsel %vm64_vm12, %v184_v57, %v183_v54 }
  0x5e   :  { %v188_v62 = vsel %vm63_vm13, %v549_v3, %v185_v60 }
  0x5f   :  { %v190_v0 = vmul.f32 %v188_v62, %v188_v62 }
  0x61   :  { %v191_v7 = vmul.f32 -0.001358992, %v190_v0  ;;  %v198_v6 = vmul.f32 -0.00019511016, %v190_v0 }
  0x63   :  { %v192_v11 = vadd.f32 0.041655596, %v191_v7  ;;  %v199_v13 = vadd.f32 0.008332121, %v198_v6 }
  0x65   :  { %v193_v18 = vmul.f32 %v192_v11, %v190_v0  ;;  %v200_v19 = vmul.f32 %v199_v13, %v190_v0 }
  0x67   :  { %v194_v22 = vadd.f32 -0.4999988, %v193_v18  ;;  %v201_v23 = vadd.f32 -0.16666654, %v200_v19 }
  0x69   :  { %v195_v27 = vmul.f32 %v194_v22, %v190_v0  ;;  %v202_v28 = vmul.f32 %v201_v23, %v190_v0 }
  0x6b   :  { %v196_v30 = vadd.f32 1.0, %v195_v27  ;;  %v203_v31 = vadd.f32 1.0, %v202_v28 }
  0x6d   :  { %v204_v33 = vmul.f32 %v203_v31, %v188_v62  ;;  %v213_v35 = vxor.u32 2147483648, %v196_v30 }
  0x6f   :  { %v210_v36 = vxor.u32 2147483648, %v204_v33  ;;  %v214_v37 = vsel %vm212_vm2, %v213_v35, %v204_v33  ;;  %v368_v38 = vsel %vm366_vm3, %v213_v35, %v204_v33 }
  0x71   :  { %v211_v40 = vsel %vm209_vm6, %v196_v30, %v210_v36  ;;  %v365_v12 = vsel %vm363_vm7, %v196_v30, %v210_v36 }
  0x72   :  { %v215_v41 = vsel %vm208_vm5, %v211_v40, %v214_v37  ;;  %v369_v42 = vsel %vm362_vm8, %v365_v12, %v368_v38 }
  0x73   :  { %v216_v34 = vsel %vm205_vm9, nan, %v215_v41  ;;  %v370_v43 = vsel %vm205_vm9, nan, %v369_v42 }
  0x74   :  { %v371_v44 = vmul.f32 2.0, %v370_v43  ;;  %v372_v45 = vmul.f32 %v216_v34, %v58_v39 }
  0x76   :  { %373 = vst [vmem:[#allocation7] sm:$0x3] %v372_v45  ;;  %v374_v1 = vmul.f32 %v371_v44, %v216_v34 }
  0x78   :  { %v375_v46 = vmul.f32 %v374_v1, %v58_v39  ;;  %v378_v47 = vmul.f32 %v374_v1, %v371_v44 }
  0x7a   :  { %377 = vst [vmem:[#allocation7 + $0x2] sm:$0x3] %v375_v46  ;;  %v379_v48 = vsub.f32 %v378_v47, %v216_v34 }
  0x7c   :  { %v380_v49 = vmul.f32 %v379_v48, %v58_v39  ;;  %v383_v50 = vmul.f32 %v379_v48, %v371_v44 }
  0x7e   :  { %382 = vst [vmem:[#allocation7 + $0x4] sm:$0x3] %v380_v49  ;;  %v384_v51 = vsub.f32 %v383_v50, %v374_v1 }
  0x80   :  { %v385_v3 = vmul.f32 %v384_v51, %v58_v39  ;;  %v388_v52 = vmul.f32 %v384_v51, %v371_v44 }
  0x82   :  { %387 = vst [vmem:[#allocation7 + $0x6] sm:$0x3] %v385_v3  ;;  %v389_v53 = vsub.f32 %v388_v52, %v379_v48 }
  0x84   :  { %v390_v54 = vmul.f32 %v389_v53, %v58_v39  ;;  %v393_v55 = vmul.f32 %v389_v53, %v371_v44 }
  0x86   :  { %392 = vst [vmem:[#allocation7 + $0x8] sm:$0x3] %v390_v54  ;;  %v394_v56 = vsub.f32 %v393_v55, %v384_v51 }
  0x88   :  { %v395_v57 = vmul.f32 %v394_v56, %v58_v39  ;;  %v398_v58 = vmul.f32 %v394_v56, %v371_v44 }
  0x8a   :  { %397 = vst [vmem:[#allocation7 + $0xa] sm:$0x3] %v395_v57  ;;  %v399_v59 = vsub.f32 %v398_v58, %v389_v53 }
  0x8c   :  { %v400_v60 = vmul.f32 %v399_v59, %v58_v39  ;;  %v403_v61 = vmul.f32 %v399_v59, %v371_v44 }
  0x8e   :  { %402 = vst [vmem:[#allocation7 + $0xc] sm:$0x3] %v400_v60  ;;  %v404_v62 = vsub.f32 %v403_v61, %v394_v56 }
  0x90   :  { %v405_v63 = vmul.f32 %v404_v62, %v58_v39 }
  0x92   :  { %407 = vst [vmem:[#allocation7 + $0xe] sm:$0x3] %v405_v63 }
  0x93   :  { %420 = dma.vmem_to_hbm [thread:$0]  %s413_s18, 256, %s415_s21, [#allocation6], %s523_s22, %s523_s22, %s524_s23  }
  0x94   :  { %511 = dma.done.wait [#allocation6], 256  }
  0x95   :  { %512 = vsyncadd [#allocation6], 4294967040 }
  0x96   :  { %425 = vsyncpa [#allocation5], 1 }
  0x97   :  { %426 = vsyncpa [#allocation6], 1 }

</bundles_post_ra>
